<compile_context>
chip_gen: v6e
topology: v6e:2x2x1
jax: 0.10.0
libtpu: 0.0.40
codegen_flags: <defaults>
</compile_context>

<pallas_src>
import functools

import jax
import jax.numpy as jnp
from jax.experimental import pallas as pl
from jax.experimental.pallas import tpu as pltpu


# ----------------------------- Pallas kernel -------------------------------

def _mcrec_kernel(n_users,
                  u_idx_ref, i_idx_ref,          # (1, BT) int32 each
                  a_ref, b1_ref,                 # (L, n_u+n_i) bf16, (L, 1) f32
                  w2_ref, b2_ref,                # (L/2, L) bf16, (L/2, 1) f32
                  w3_ref, b3_ref,                # (L/4, L/2) bf16, (L/4, 1) f32
                  wp_ref, bp_ref,                # (L/4, 1) f32, (1, 1) f32
                  o_ref):                        # (1, BT) f32  (lane-dense)
    bt = o_ref.shape[1]
    n_total = a_ref.shape[1]                     # n_users + n_items

    u_idx = u_idx_ref[...]                       # (1, BT) int32
    i_idx = i_idx_ref[...] + n_users             # shift item ids past user ids

    # --- combined one-hot selection matrix: one iota, two compares, OR,
    #     direct bool->bf16 cast (no f32 intermediate).
    rows = jax.lax.broadcasted_iota(jnp.int32, (n_total, bt), 0)
    sel = ((rows == u_idx) | (rows == i_idx)).astype(jnp.bfloat16)  # (n_total, BT)

    # --- layer 1: gather + concat + Linear fused into ONE matmul.
    h = jnp.dot(a_ref[...], sel, preferred_element_type=jnp.float32) + b1_ref[...]
    h = jnp.maximum(h, 0.0)                      # (L, BT) f32

    # --- layer 2.
    h = jnp.dot(w2_ref[...], h.astype(jnp.bfloat16),
                preferred_element_type=jnp.float32) + b2_ref[...]
    h = jnp.maximum(h, 0.0)                      # (L/2, BT) f32

    # --- layer 3.
    h = jnp.dot(w3_ref[...], h.astype(jnp.bfloat16),
                preferred_element_type=jnp.float32) + b3_ref[...]
    h = jnp.maximum(h, 0.0)                      # (L/4, BT) f32

    # --- prediction (M=1, K=L/4): VPU multiply + sublane reduce, no MXU pass.
    logit = jnp.sum(h * wp_ref[...], axis=0, keepdims=True) + bp_ref[...]
    o_ref[...] = jax.nn.sigmoid(logit)           # (1, BT) f32, lane-dense store


# ----------------------------- Model wrapper --------------------------------

def init_mcrec_params(key, n_users, n_items, latent_dim):
    """Synthetic params matching MCRec.__init__ shapes (PyTorch (out,in) layout, f32)."""
    ks = jax.random.split(key, 10)
    L = latent_dim

    def lin(kw, kb, d_in, d_out):
        # PyTorch nn.Linear default: U(-1/sqrt(d_in), 1/sqrt(d_in))
        bound = 1.0 / jnp.sqrt(jnp.float32(d_in))
        w = jax.random.uniform(kw, (d_out, d_in), jnp.float32, -bound, bound)
        b = jax.random.uniform(kb, (d_out, 1), jnp.float32, -bound, bound)
        return w, b

    # Embedding tables stored transposed (L, n), f32.
    user_embT = jax.random.normal(ks[0], (n_users, L), jnp.float32).T
    item_embT = jax.random.normal(ks[1], (n_items, L), jnp.float32).T

    # MLP: (2L -> L), (L -> L/2), (L/2 -> L/4); prediction: (L/4 -> 1)
    w1, b1 = lin(ks[2], ks[3], 2 * L, L)
    w2, b2 = lin(ks[4], ks[5], L, L // 2)
    w3, b3 = lin(ks[6], ks[7], L // 2, L // 4)
    wp, bp = lin(ks[8], ks[9], L // 4, 1)

    return dict(user_embT=user_embT, item_embT=item_embT,
                mlp=(w1, b1, w2, b2, w3, b3, wp, bp))


def mcrec_forward(params, user_input, item_input, *, num_tiles=None):
    """Fused gather + MLP + prediction + sigmoid; returns (B, 1) f32."""
    B = int(user_input.shape[0])
    L, n_users = params["user_embT"].shape
    n_items = params["item_embT"].shape[1]
    w1, b1, w2, b2, w3, b3, wp, bp = params["mlp"]

    # --- fold the embedding gather + concat into layer 1 (f32, then bf16).
    a_u = w1[:, :L] @ params["user_embT"]          # (L, n_users)
    a_i = w1[:, L:] @ params["item_embT"]          # (L, n_items)
    a = jnp.concatenate([a_u, a_i], axis=1).astype(jnp.bfloat16)  # (L, n_u+n_i)
    w2b, w3b = w2.astype(jnp.bfloat16), w3.astype(jnp.bfloat16)
    wp_col = wp.reshape(L // 4, 1).astype(jnp.float32)            # VPU operand

    # --- tile selection: minimal 128-padding, split into equal 128-multiple
    #     tiles.  2 tiles by default for B >= 256 (feeds both v7x TCs), capped
    #     so a tile never exceeds 8192 rows.
    tiles128 = pl.cdiv(B, 128)
    if num_tiles is None:
        num_tiles = max(2 if tiles128 >= 2 else 1, pl.cdiv(tiles128, 8192 // 128))
    b_tile = pl.cdiv(tiles128, num_tiles) * 128
    padded_B = num_tiles * b_tile

    def pad_idx(idx):
        idx = idx.astype(jnp.int32)
        idx = jnp.pad(idx, (0, padded_B - B))      # padded rows gather index 0
        return idx.reshape(1, padded_B)

    u_idx = pad_idx(user_input)
    i_idx = pad_idx(item_input)

    batch_spec = pl.BlockSpec((1, b_tile), lambda i: (0, i))

    def resident(arr):                             # DMA'd once, stays in VMEM
        return pl.BlockSpec(arr.shape, lambda i: (0, 0))

    out = pl.pallas_call(
        functools.partial(_mcrec_kernel, n_users),
        out_shape=jax.ShapeDtypeStruct((1, padded_B), jnp.float32),
        grid_spec=pltpu.PrefetchScalarGridSpec(
            num_scalar_prefetch=0,
            grid=(num_tiles,),
            in_specs=[batch_spec, batch_spec,
                      resident(a), resident(b1),
                      resident(w2b), resident(b2),
                      resident(w3b), resident(b3),
                      resident(wp_col), resident(bp)],
            out_specs=batch_spec,
        ),
        compiler_params=pltpu.CompilerParams(
            dimension_semantics=("parallel",)),
    )(u_idx, i_idx, a, b1, w2b, b2, w3b, b3, wp_col, bp)

    return out[0, :B].reshape(B, 1)


def mcrec_forward_ref(params, user_input, item_input):
    """Pure-JAX f32 reference for correctness check."""
    u_embT = params["user_embT"]
    i_embT = params["item_embT"]
    w1, b1, w2, b2, w3, b3, wp, bp = params["mlp"]

    u = u_embT.T[user_input]                      # (B, L)
    it = i_embT.T[item_input]                     # (B, L)
    h = jnp.concatenate([u, it], axis=-1)         # (B, 2L)
    h = jnp.maximum(h @ w1.T + b1[:, 0], 0.0)
    h = jnp.maximum(h @ w2.T + b2[:, 0], 0.0)
    h = jnp.maximum(h @ w3.T + b3[:, 0], 0.0)
    return jax.nn.sigmoid(h @ wp.T + bp[:, 0])    # (B, 1)


# --------------------------------- Main --------------------------------------

if __name__ == "__main__":
    key = jax.random.PRNGKey(0)
    k_params, k_u, k_i = jax.random.split(key, 3)

    n_users, n_items = 50, 100
    latent_dim = 32
    batch = 8

    params = init_mcrec_params(k_params, n_users, n_items, latent_dim)

    user_input = jax.random.randint(k_u, (batch,), 0, n_users, dtype=jnp.int32)
    item_input = jax.random.randint(k_i, (batch,), 0, n_items, dtype=jnp.int32)

    out = mcrec_forward(params, user_input, item_input)
    out = jax.block_until_ready(out)

    ref = jax.block_until_ready(mcrec_forward_ref(params, user_input, item_input))
    assert out.shape == (batch, 1)
    # bf16 MXU operands vs f32 reference -> loosened tolerance (post-sigmoid).
    assert jnp.allclose(out, ref, atol=1e-2), "mismatch vs reference"

    print("KERNEL_OK")
</pallas_src>

<mosaic_0001>
module attributes {stable_mosaic.version = 11 : i64} {
  func.func @_mcrec_kernel(%arg0: i32, %arg1: memref<1x128xi32, #tpu.memory_space<vmem>>, %arg2: memref<1x128xi32, #tpu.memory_space<vmem>>, %arg3: memref<32x150xbf16, #tpu.memory_space<vmem>>, %arg4: memref<32x1xf32, #tpu.memory_space<vmem>>, %arg5: memref<16x32xbf16, #tpu.memory_space<vmem>>, %arg6: memref<16x1xf32, #tpu.memory_space<vmem>>, %arg7: memref<8x16xbf16, #tpu.memory_space<vmem>>, %arg8: memref<8x1xf32, #tpu.memory_space<vmem>>, %arg9: memref<8x1xf32, #tpu.memory_space<vmem>>, %arg10: memref<1x1xf32, #tpu.memory_space<vmem>>, %arg11: memref<1x128xf32, #tpu.memory_space<vmem>>) attributes {dimension_semantics = [#tpu.dimension_semantics<parallel>], iteration_bounds = array<i64: 1>, scalar_prefetch = 0 : i64, scratch_operands = 0 : i64, tpu.core_type = #tpu.core_type<tc>, window_params = [{transform_indices = @transform_0, window_bounds = array<i64: 1, 128>}, {transform_indices = @transform_1, window_bounds = array<i64: 1, 128>}, {pipeline_mode = #tpu.pipeline_mode<synchronous>, transform_indices = @transform_2, window_bounds = array<i64: 32, 150>}, {pipeline_mode = #tpu.pipeline_mode<synchronous>, transform_indices = @transform_3, window_bounds = array<i64: 32, 1>}, {pipeline_mode = #tpu.pipeline_mode<synchronous>, transform_indices = @transform_4, window_bounds = array<i64: 16, 32>}, {pipeline_mode = #tpu.pipeline_mode<synchronous>, transform_indices = @transform_5, window_bounds = array<i64: 16, 1>}, {pipeline_mode = #tpu.pipeline_mode<synchronous>, transform_indices = @transform_6, window_bounds = array<i64: 8, 16>}, {pipeline_mode = #tpu.pipeline_mode<synchronous>, transform_indices = @transform_7, window_bounds = array<i64: 8, 1>}, {pipeline_mode = #tpu.pipeline_mode<synchronous>, transform_indices = @transform_8, window_bounds = array<i64: 8, 1>}, {pipeline_mode = #tpu.pipeline_mode<synchronous>, transform_indices = @transform_9, window_bounds = array<i64: 1, 1>}, {transform_indices = @transform_10, window_bounds = array<i64: 1, 128>}]} {
    %c0 = arith.constant 0 : index
    %c0_0 = arith.constant 0 : index
    %0 = vector.load %arg1[%c0, %c0_0] : memref<1x128xi32, #tpu.memory_space<vmem>>, vector<1x128xi32>
    %c0_1 = arith.constant 0 : index
    %c0_2 = arith.constant 0 : index
    %1 = vector.load %arg2[%c0_1, %c0_2] : memref<1x128xi32, #tpu.memory_space<vmem>>, vector<1x128xi32>
    %c50_i32 = arith.constant 50 : i32
    %2 = vector.broadcast %c50_i32 : i32 to vector<1x128xi32>
    %3 = arith.addi %1, %2 : vector<1x128xi32>
    %4 = tpu.iota {dimensions = array<i32: 0>} : vector<150x128xi32>
    %5 = vector.broadcast %0 : vector<1x128xi32> to vector<150x128xi32>
    %6 = arith.cmpi eq, %4, %5 : vector<150x128xi32>
    %7 = vector.broadcast %3 : vector<1x128xi32> to vector<150x128xi32>
    %8 = arith.cmpi eq, %4, %7 : vector<150x128xi32>
    %9 = arith.ori %6, %8 : vector<150x128xi1>
    %10 = arith.extui %9 : vector<150x128xi1> to vector<150x128xi32>
    %11 = arith.sitofp %10 : vector<150x128xi32> to vector<150x128xf32>
    %12 = arith.truncf %11 : vector<150x128xf32> to vector<150x128xbf16>
    %c0_3 = arith.constant 0 : index
    %c0_4 = arith.constant 0 : index
    %13 = vector.load %arg3[%c0_3, %c0_4] : memref<32x150xbf16, #tpu.memory_space<vmem>>, vector<32x150xbf16>
    %cst = arith.constant dense<0.000000e+00> : vector<32x128xf32>
    %14 = tpu.matmul %13, %12, %cst {dimension_numbers = #tpu.dot_dimension_numbers<[1], [0], [0], [1], [0, 0, 1, 1], [], []>} : vector<32x150xbf16>, vector<150x128xbf16>, vector<32x128xf32> -> vector<32x128xf32>
    %c0_5 = arith.constant 0 : index
    %c0_6 = arith.constant 0 : index
    %15 = vector.load %arg4[%c0_5, %c0_6] : memref<32x1xf32, #tpu.memory_space<vmem>>, vector<32x1xf32>
    %16 = vector.broadcast %15 : vector<32x1xf32> to vector<32x128xf32>
    %17 = arith.addf %14, %16 : vector<32x128xf32>
    %cst_7 = arith.constant 0.000000e+00 : f32
    %18 = vector.broadcast %cst_7 : f32 to vector<32x128xf32>
    %19 = arith.maximumf %17, %18 : vector<32x128xf32>
    %c0_8 = arith.constant 0 : index
    %c0_9 = arith.constant 0 : index
    %20 = vector.load %arg5[%c0_8, %c0_9] : memref<16x32xbf16, #tpu.memory_space<vmem>>, vector<16x32xbf16>
    %21 = arith.truncf %19 : vector<32x128xf32> to vector<32x128xbf16>
    %cst_10 = arith.constant dense<0.000000e+00> : vector<16x128xf32>
    %22 = tpu.matmul %20, %21, %cst_10 {dimension_numbers = #tpu.dot_dimension_numbers<[1], [0], [0], [1], [0, 0, 1, 1], [], []>} : vector<16x32xbf16>, vector<32x128xbf16>, vector<16x128xf32> -> vector<16x128xf32>
    %c0_11 = arith.constant 0 : index
    %c0_12 = arith.constant 0 : index
    %23 = vector.load %arg6[%c0_11, %c0_12] : memref<16x1xf32, #tpu.memory_space<vmem>>, vector<16x1xf32>
    %24 = vector.broadcast %23 : vector<16x1xf32> to vector<16x128xf32>
    %25 = arith.addf %22, %24 : vector<16x128xf32>
    %cst_13 = arith.constant 0.000000e+00 : f32
    %26 = vector.broadcast %cst_13 : f32 to vector<16x128xf32>
    %27 = arith.maximumf %25, %26 : vector<16x128xf32>
    %c0_14 = arith.constant 0 : index
    %c0_15 = arith.constant 0 : index
    %28 = vector.load %arg7[%c0_14, %c0_15] : memref<8x16xbf16, #tpu.memory_space<vmem>>, vector<8x16xbf16>
    %29 = arith.truncf %27 : vector<16x128xf32> to vector<16x128xbf16>
    %cst_16 = arith.constant dense<0.000000e+00> : vector<8x128xf32>
    %30 = tpu.matmul %28, %29, %cst_16 {dimension_numbers = #tpu.dot_dimension_numbers<[1], [0], [0], [1], [0, 0, 1, 1], [], []>} : vector<8x16xbf16>, vector<16x128xbf16>, vector<8x128xf32> -> vector<8x128xf32>
    %c0_17 = arith.constant 0 : index
    %c0_18 = arith.constant 0 : index
    %31 = vector.load %arg8[%c0_17, %c0_18] : memref<8x1xf32, #tpu.memory_space<vmem>>, vector<8x1xf32>
    %32 = vector.broadcast %31 : vector<8x1xf32> to vector<8x128xf32>
    %33 = arith.addf %30, %32 : vector<8x128xf32>
    %cst_19 = arith.constant 0.000000e+00 : f32
    %34 = vector.broadcast %cst_19 : f32 to vector<8x128xf32>
    %35 = arith.maximumf %33, %34 : vector<8x128xf32>
    %c0_20 = arith.constant 0 : index
    %c0_21 = arith.constant 0 : index
    %36 = vector.load %arg9[%c0_20, %c0_21] : memref<8x1xf32, #tpu.memory_space<vmem>>, vector<8x1xf32>
    %37 = vector.broadcast %36 : vector<8x1xf32> to vector<8x128xf32>
    %38 = arith.mulf %35, %37 : vector<8x128xf32>
    %cst_22 = arith.constant dense<0.000000e+00> : vector<128xf32>
    %39 = vector.multi_reduction <add>, %38, %cst_22 [0] : vector<8x128xf32> to vector<128xf32>
    %40 = vector.shape_cast %39 : vector<128xf32> to vector<1x128xf32>
    %c0_23 = arith.constant 0 : index
    %c0_24 = arith.constant 0 : index
    %41 = vector.load %arg10[%c0_23, %c0_24] : memref<1x1xf32, #tpu.memory_space<vmem>>, vector<1x1xf32>
    %42 = vector.broadcast %41 : vector<1x1xf32> to vector<1x128xf32>
    %43 = arith.addf %40, %42 : vector<1x128xf32>
    %44 = arith.negf %43 : vector<1x128xf32>
    %45 = math.exp %44 : vector<1x128xf32>
    %cst_25 = arith.constant 1.000000e+00 : f32
    %46 = vector.broadcast %cst_25 : f32 to vector<1x128xf32>
    %47 = arith.addf %46, %45 : vector<1x128xf32>
    %48 = arith.divf %46, %47 : vector<1x128xf32>
    %c0_26 = arith.constant 0 : index
    %c0_27 = arith.constant 0 : index
    %49 = vector.load %arg11[%c0_26, %c0_27] : memref<1x128xf32, #tpu.memory_space<vmem>>, vector<1x128xf32>
    tpu.vector_store %arg11[%c0_26, %c0_27], %48 {strides = array<i32>} : memref<1x128xf32, #tpu.memory_space<vmem>>, vector<1x128xf32>,
    return
  }
  func.func @transform_0(%arg0: i32) -> (i32, i32) {
    %c0_i32 = arith.constant 0 : i32
    %c0_i32_0 = arith.constant 0 : i32
    return %c0_i32, %arg0 : i32, i32
  }
  func.func @transform_1(%arg0: i32) -> (i32, i32) {
    %c0_i32 = arith.constant 0 : i32
    %c0_i32_0 = arith.constant 0 : i32
    return %c0_i32, %arg0 : i32, i32
  }
  func.func @transform_2(%arg0: i32) -> (i32, i32) {
    %c0_i32 = arith.constant 0 : i32
    %c0_i32_0 = arith.constant 0 : i32
    %c0_i32_1 = arith.constant 0 : i32
    return %c0_i32, %c0_i32_0 : i32, i32
  }
  func.func @transform_3(%arg0: i32) -> (i32, i32) {
    %c0_i32 = arith.constant 0 : i32
    %c0_i32_0 = arith.constant 0 : i32
    %c0_i32_1 = arith.constant 0 : i32
    return %c0_i32, %c0_i32_0 : i32, i32
  }
  func.func @transform_4(%arg0: i32) -> (i32, i32) {
    %c0_i32 = arith.constant 0 : i32
    %c0_i32_0 = arith.constant 0 : i32
    %c0_i32_1 = arith.constant 0 : i32
    return %c0_i32, %c0_i32_0 : i32, i32
  }
  func.func @transform_5(%arg0: i32) -> (i32, i32) {
    %c0_i32 = arith.constant 0 : i32
    %c0_i32_0 = arith.constant 0 : i32
    %c0_i32_1 = arith.constant 0 : i32
    return %c0_i32, %c0_i32_0 : i32, i32
  }
  func.func @transform_6(%arg0: i32) -> (i32, i32) {
    %c0_i32 = arith.constant 0 : i32
    %c0_i32_0 = arith.constant 0 : i32
    %c0_i32_1 = arith.constant 0 : i32
    return %c0_i32, %c0_i32_0 : i32, i32
  }
  func.func @transform_7(%arg0: i32) -> (i32, i32) {
    %c0_i32 = arith.constant 0 : i32
    %c0_i32_0 = arith.constant 0 : i32
    %c0_i32_1 = arith.constant 0 : i32
    return %c0_i32, %c0_i32_0 : i32, i32
  }
  func.func @transform_8(%arg0: i32) -> (i32, i32) {
    %c0_i32 = arith.constant 0 : i32
    %c0_i32_0 = arith.constant 0 : i32
    %c0_i32_1 = arith.constant 0 : i32
    return %c0_i32, %c0_i32_0 : i32, i32
  }
  func.func @transform_9(%arg0: i32) -> (i32, i32) {
    %c0_i32 = arith.constant 0 : i32
    %c0_i32_0 = arith.constant 0 : i32
    %c0_i32_1 = arith.constant 0 : i32
    return %c0_i32, %c0_i32_0 : i32, i32
  }
  func.func @transform_10(%arg0: i32) -> (i32, i32) {
    %c0_i32 = arith.constant 0 : i32
    %c0_i32_0 = arith.constant 0 : i32
    return %c0_i32, %arg0 : i32, i32
  }
}

</mosaic_0001>

<bundles_post_ra>
// kernel: tpu_custom_call.1
= control target key start
LH: loop header
LB: loop body
LE: loop exit
PB: predicated region body
PF: predicated region fallthrough
CT: control target
= control target key end

     0   :  { %s852_s0 = inlined_call_operand.vmem [shape: s32[1,128], index: 0, kind: input, shape index: {}]   ;;  %s853_s1 = inlined_call_operand.vmem [shape: s32[1,128], index: 1, kind: input, shape index: {}]   ;;  %s854_s2 = inlined_call_operand.vmem [shape: bf16[32,150], index: 2, kind: input, shape index: {}]   ;;  %s855_s3 = inlined_call_operand.vmem [shape: f32[32,1], index: 3, kind: input, shape index: {}]   ;;  %s856_s4 = inlined_call_operand.vmem [shape: bf16[16,32], index: 4, kind: input, shape index: {}]   ;;  %s857_s5 = inlined_call_operand.vmem [shape: f32[16,1], index: 5, kind: input, shape index: {}]   ;;  %s858_s6 = inlined_call_operand.vmem [shape: bf16[8,16], index: 6, kind: input, shape index: {}]   ;;  %s859_s7 = inlined_call_operand.vmem [shape: f32[8,1], index: 7, kind: input, shape index: {}]   ;;  %s860_s8 = inlined_call_operand.vmem [shape: f32[8,1], index: 8, kind: input, shape index: {}]   ;;  %s861_s9 = inlined_call_operand.<no memory space> [shape: f32[1,1], index: 9, kind: input, shape index: {}]   ;;  %s862_s10 = inlined_call_operand.hbm [shape: f32[1,128], index: 10, kind: output, shape index: {}]  }
   0x1   :  { %v15_v0 = vstv %s861_s9 }
   0x2   :  { %16 = vst [vmem:[#allocation2] sm:$0x1] %v15_v0 }
   0x3   :  { %v40_v1 = vld [vmem:[%s853_s1] sm:$0x1]  ;;  %v42_v2 = vlaneseq  ;;  %v558_v3 = vmov 0   ;;  %v527_v6 = vld [vmem:[%s854_s2 + $0x4] ss:$8 sps:$4 sm:$0xff]   ;;  %vm221_vm0 = vcmask 179200  }
   0x4   :  { %232 = vmatprep.subr.bf16.mxu0 %v558_v3  ;;  %523 = vset.pattern.permute.xlu0 %v558_v3  ;;  %v41_v4 = vadd.s32 50, %v40_v1  ;;  %v559_v7 = vmov 0.0   ;;  %v636_v8 = vld [vmem:[%s852_s0] ss:$0 sm:$0xff]  ;;  %v181_v13 = vld [vmem:[%s855_s3 + $0x10] sm:$0xff]  ;;  %v182_v17 = vld [vmem:[%s855_s3 + $0x18] sm:$0xff] }
   0x5   :  { %v626_v5 = vshrl.u32 %v42_v2, 7  ;;  %524 = vset.pattern.permute.xlu1 %v558_v3  ;;  %504 = vmatprep.subr.bf16.mxu1 %v559_v7  ;;  %v179_v16 = vld [vmem:[%s855_s3] sm:$0xff]  ;;  %v180_v19 = vld [vmem:[%s855_s3 + $0x8] sm:$0xff]  ;;  %v560_v23 = vmov 1.0|1.0  }
   0x6   :  { %493 = vmatprep.mubr.msk.bf16.mxu0 %vm221_vm0, %v527_v6  ;;  %195 = vperm.xlu0 %523, %v181_v13   ;;  %v289_v22 = vld [vmem:[%s857_s5] sm:$0xff]  ;;  %v290_v26 = vld [vmem:[%s857_s5 + $0x8] sm:$0xff] }
   0x7   :  { %v57_v9 = vadd.s32 112, %v626_v5  ;;  %v58_v10 = vadd.s32 120, %v626_v5  ;;  %v87_v11 = vsub.s32 0, %v626_v5  ;;  %v55_v12 = vadd.s32 96, %v626_v5  ;;  %185 = vperm.xlu1 %524, %v179_v16   ;;  %v355_v30 = vld [vmem:[%s859_s7] sm:$0xff] }
   0x8   :  { %v56_v15 = vadd.s32 104, %v626_v5  ;;  %v53_v18 = vadd.s32 80, %v626_v5  ;;  %v54_v20 = vadd.s32 88, %v626_v5  ;;  %v51_v21 = vadd.s32 64, %v626_v5  ;;  %v406_v32 = vld [vmem:[%s860_s8] sm:$0xff] }
   0x9   :  { %vm80_vm1 = vcmp.eq.s32.totalorder %v57_v9, %v636_v8  ;;  %v649_v14 = vrot.slane %v41_v4, %v87_v11  ;;  %vm81_vm2 = vcmp.eq.s32.totalorder %v58_v10, %v636_v8  ;;  %vm78_vm6 = vcmp.eq.s32.totalorder %v55_v12, %v636_v8  ;;  %v419_v37 = vld [vmem:[#allocation2] sm:$0x1] }
   0xa   :  { %vm79_vm9 = vcmp.eq.s32.totalorder %v56_v15, %v636_v8  ;;  %200 = vperm.xlu0 %523, %v182_v17   ;;  %vm76_vm13 = vcmp.eq.s32.totalorder %v53_v18, %v636_v8  ;;  %v52_v25 = vadd.s32 72, %v626_v5  ;;  %v49_v27 = vadd.s32 48, %v626_v5 }
   0xb   :  { %vm103_vm3 = vcmp.eq.s32.totalorder %v57_v9, %v649_v14  ;;  %vm104_vm4 = vcmp.eq.s32.totalorder %v58_v10, %v649_v14  ;;  %vm101_vm7 = vcmp.eq.s32.totalorder %v55_v12, %v649_v14  ;;  %vm102_vm10 = vcmp.eq.s32.totalorder %v56_v15, %v649_v14  ;;  %190 = vperm.xlu1 %524, %v180_v19  }
   0xc   :  { %vm122_vm5 = vmor %vm80_vm1, %vm103_vm3  ;;  %vm99_vm14 = vcmp.eq.s32.totalorder %v53_v18, %v649_v14  ;;  %vm77_vm1 = vcmp.eq.s32.totalorder %v54_v20, %v636_v8  ;;  %v50_v29 = vadd.s32 56, %v626_v5  ;;  %v47_v34 = vadd.s32 32, %v626_v5 }
   0xd   :  { %vm123_vm8 = vmor %vm81_vm2, %vm104_vm4  ;;  %vm100_vm2 = vcmp.eq.s32.totalorder %v54_v20, %v649_v14  ;;  %v48_v36 = vadd.s32 40, %v626_v5  ;;  %v45_v38 = vadd.s32 16, %v626_v5  ;;  %v46_v40 = vadd.s32 24, %v626_v5 }
   0xe   :  { %vm475_vm11 = vmpackc.low %vm123_vm8, %vm122_vm5  ;;  %293 = vperm.xlu0 %523, %v289_v22   ;;  %vm74_vm5 = vcmp.eq.s32.totalorder %v51_v21, %v636_v8  ;;  %vm75_vm8 = vcmp.eq.s32.totalorder %v52_v25, %v636_v8  ;;  %v44_v43 = vadd.s32 8, %v626_v5  ;;  %v61_v45 = vadd.s32 144, %v626_v5 }
   0xf   :  { %476 = vmatpush1.bf16.msk.msra.mxu0 %vm475_vm11, %v560_v23  ;;  %vm675_vm12 = vmor %vm78_vm6, %vm101_vm7  ;;  %vm97_vm6 = vcmp.eq.s32.totalorder %v51_v21, %v649_v14  ;;  %298 = vperm.xlu1 %524, %v290_v26   ;;  %v59_v51 = vadd.s32 128, %v626_v5  ;;  %v60_v52 = vadd.s32 136, %v626_v5 }
  0x10   :  { %234 = vmatprep.subr.bf16.mxu0 %v558_v3  ;;  %vm121_vm15 = vmor %vm79_vm9, %vm102_vm10  ;;  %vm98_vm9 = vcmp.eq.s32.totalorder %v52_v25, %v649_v14 }
  0x11   :  { %vm477_vm3 = vmpackc.low %vm121_vm15, %vm675_vm12  ;;  %vm72_vm12 = vcmp.eq.s32.totalorder %v49_v27, %v636_v8  ;;  %vm73_vm15 = vcmp.eq.s32.totalorder %v50_v29, %v636_v8 }
  0x12   :  { %vm693_vm4 = vmor %vm76_vm13, %vm99_vm14  ;;  %vm95_vm13 = vcmp.eq.s32.totalorder %v49_v27, %v649_v14  ;;  %358 = vperm.xlu0 %523, %v355_v30  }
  0x13   :  { %478 = vmatpush1.bf16.msk.msra.mxu0 %vm477_vm3, %v560_v23  ;;  %vm704_vm7 = vmor %vm77_vm1, %vm100_vm2  ;;  %vm96_vm1 = vcmp.eq.s32.totalorder %v50_v29, %v649_v14  ;;  %409 = vperm.xlu1 %524, %v406_v32  }
  0x14   :  { %236 = vmatprep.subr.bf16.mxu0 %v558_v3  ;;  %vm479_vm10 = vmpackc.low %vm704_vm7, %vm693_vm4  ;;  %vm71_vm7 = vcmp.eq.s32.totalorder %v48_v36, %v636_v8 }
  0x15   :  { %vm718_vm11 = vmor %vm74_vm5, %vm97_vm6  ;;  %vm70_vm5 = vcmp.eq.s32.totalorder %v47_v34, %v636_v8  ;;  %vm93_vm6 = vcmp.eq.s32.totalorder %v47_v34, %v649_v14 }
  0x16   :  { %vm725_vm14 = vmor %vm75_vm8, %vm98_vm9  ;;  %422 = vperm.xlu0 %523, %v419_v37   ;;  %vm94_vm8 = vcmp.eq.s32.totalorder %v48_v36, %v649_v14 }
  0x17   :  { %480 = vmatpush1.bf16.msk.msra.mxu0 %vm479_vm10, %v560_v23  ;;  %vm481_vm2 = vmpackc.low %vm725_vm14, %vm718_vm11  ;;  %vm68_vm10 = vcmp.eq.s32.totalorder %v45_v38, %v636_v8  ;;  %vm91_vm11 = vcmp.eq.s32.totalorder %v45_v38, %v649_v14  ;;  %vm92_vm14 = vcmp.eq.s32.totalorder %v46_v40, %v649_v14 }
  0x18   :  { %238 = vmatprep.subr.bf16.mxu0 %v558_v3  ;;  %vm739_vm3 = vmor %vm72_vm12, %vm95_vm13  ;;  %vm69_vm13 = vcmp.eq.s32.totalorder %v46_v40, %v636_v8 }
  0x19   :  { %vm744_vm4 = vmor %vm73_vm15, %vm96_vm1 }
  0x1a   :  { %vm483_vm9 = vmpackc.low %vm744_vm4, %vm739_vm3  ;;  %vm66_vm3 = vcmp.eq.s32.totalorder %v626_v5, %v636_v8  ;;  %vm89_vm4 = vcmp.eq.s32.totalorder %v626_v5, %v649_v14 }
  0x1b   :  { %482 = vmatpush1.bf16.msk.msra.mxu0 %vm481_vm2, %v560_v23  ;;  %vm760_vm12 = vmor %vm70_vm5, %vm93_vm6  ;;  %vm67_vm6 = vcmp.eq.s32.totalorder %v44_v43, %v636_v8 }
  0x1c   :  { %240 = vmatprep.subr.bf16.mxu0 %v558_v3  ;;  %vm767_vm15 = vmor %vm71_vm7, %vm94_vm8  ;;  %vm90_vm7 = vcmp.eq.s32.totalorder %v44_v43, %v649_v14 }
  0x1d   :  { %vm772_vm1 = vmor %vm68_vm10, %vm91_vm11  ;;  %vm107_vm10 = vcmp.eq.s32.totalorder %v61_v45, %v649_v14 }
  0x1e   :  { %vm777_vm2 = vmor %vm69_vm13, %vm92_vm14 }
  0x1f   :  { %484 = vmatpush1.bf16.msk.msra.mxu0 %vm483_vm9, %v560_v23  ;;  %vm485_vm5 = vmpackc.low %vm767_vm15, %vm760_vm12  ;;  %vm84_vm9 = vcmp.eq.s32.totalorder %v61_v45, %v636_v8 }
  0x20   :  { %242 = vmatprep.subr.bf16.mxu0 %v558_v3  ;;  %vm487_vm8 = vmpackc.low %vm777_vm2, %vm772_vm1 }
  0x21   :  { %vm798_vm11 = vmor %vm66_vm3, %vm89_vm4 }
  0x22   :  { %vm803_vm12 = vmor %vm67_vm6, %vm90_vm7 }
  0x23   :  { %486 = vmatpush1.bf16.msk.msra.mxu0 %vm485_vm5, %v560_v23  ;;  %vm126_vm13 = vmor %vm84_vm9, %vm107_vm10 }
  0x24   :  { %244 = vmatprep.subr.bf16.mxu0 %v558_v3  ;;  %v470_v50 = vsel %vm126_vm13, 1.0, %v559_v7  ;;  %vm489_vm14 = vmpackc.low %vm803_vm12, %vm798_vm11 }
  0x25   :  { %v174_v53 = vpack.c.bf16 %v470_v50, %v470_v50 }
  0x27   :  { %488 = vmatpush1.bf16.msk.msra.mxu0 %vm487_vm8, %v560_v23 }
  0x28   :  { %246 = vmatprep.subr.bf16.mxu0 %v558_v3 }
  0x29   :  { %17 = vsyncpa [#allocation4], 0  ;;  %vm228_vm15 = vcmask 1042432   ;;  %vm82_vm1 = vcmp.eq.s32.totalorder %v59_v51, %v636_v8  ;;  %vm105_vm2 = vcmp.eq.s32.totalorder %v59_v51, %v649_v14  ;;  %vm83_vm3 = vcmp.eq.s32.totalorder %v60_v52, %v636_v8  ;;  %v525_v55 = vld [vmem:[%s854_s2] ss:$8 sps:$4 sm:$0xff]  }
  0x2a   :  { %vm106_vm4 = vcmp.eq.s32.totalorder %v60_v52, %v649_v14  ;;  %v230_v54 = vsel %vm228_vm15, %v174_v53, 0  ;;  %vm124_vm5 = vmor %vm82_vm1, %vm105_vm2  ;;  %v528_v56 = vld [vmem:[%s854_s2 + $0x14] ss:$8 sps:$4 sm:$0xff]   ;;  %v530_v57 = vld [vmem:[%s854_s2 + $0x10] ss:$8 sps:$4 sm:$0xff]   ;;  %vm561_vm8 = vmmov 0  }
  0x2b   :  { %490 = vmatpush1.bf16.msk.msra.mxu0 %vm489_vm14, %v560_v23  ;;  %vm125_vm6 = vmor %vm83_vm3, %vm106_vm4  ;;  %508 = vmatprep.mubr.msk.bf16.mxu1 %vm561_vm8, %v559_v7  ;;  %v531_v19 = vld [vmem:[%s856_s4] sm:$0xff]   ;;  %vm361_vm9 = vcmask 130048  }
  0x2c   :  { %260 = vmatprep.subr.bf16.mxu0 %v558_v3  ;;  %vm491_vm7 = vmpackc.low %vm125_vm6, %vm124_vm5  ;;  %v353_v31 = vld [vmem:[%s858_s6] sm:$0xf]  ;;  %s562_s6 = smov [#allocation3]  }
  0x2d   :  { %s443_s18 = sshll.u32 %s562_s6, 4  ;;  %s444_s18 = int_to_ptr.vmem [resolvable:$true] %s443_s18 }
  0x2e   :  { %s536_s1 = scalar_lea.vmem %s444_s18, 16  ;;  %s540_s9 = scalar_lea.vmem %s444_s18, 32 }
  0x2f   :  { %261 = vmatpush2.bf16.msra.mxu0 %v230_v54  ;;  %p537_p0 = scmp.ne.s32.totalorder %s444_s18, %s536_s1  ;;  %p541_p1 = scmp.lt.s32.totalorder %s444_s18, %s444_s18 }
  0x30   :  { %262 = vmatprep.subr.bf16.mxu0 %v558_v3  ;;  %p542_p2 = scmp.lt.s32.totalorder %s540_s9, %s536_s1 }
  0x32   :  { %p543_p3 = por %p542_p2, %p541_p1 }
  0x33   :  { %492 = vmatpush2.bf16.msk.msra.mxu0 %vm491_vm7, %v560_v23 }
  0x34   :  { %p544_p4 = pnand %p543_p3, %p537_p0 }
  0x36   :  { %265 = vmatmul.mubr.bf16.vlgmr.msra.gmra.mxu0 %v525_v55 }
  0x37   :  { %494 = vmatprep.mubr.msk.bf16.mxu0 %vm221_vm0, %v528_v56  ;;  %vm306_vm0 = vcmask 261120  }
  0x3e   :  { %273 = vmatmul.mubr.bf16.gmra.mxu0 %v530_v57 }
  0x81   :  { %v196_v62 = vpop.permute.xlu0 %195 }
  0x82   :  { %v186_v60 = vpop.permute.xlu1 %185 }
  0x85   :  { %v201_v4 = vpop.permute.xlu0 %200 }
  0x86   :  { %v191_v1 = vpop.permute.xlu1 %190 }
  0x89   :  { %v294_v21 = vpop.permute.xlu0 %293 }
  0x8a   :  { %v299_v24 = vpop.permute.xlu1 %298 }
  0x8d   :  { %v359_v32 = vpop.permute.xlu0 %358 }
  0x8e   :  { %v410_v36 = vpop.permute.xlu1 %409 }
  0x91   :  { %v423_v44 = vpop.permute.xlu0 %422 }
  0x92   :  { %v428_v46 = vrot.slane %v423_v44, %v87_v11 }
  0xf6   :  { %v266_v58 = vpop.f32.mrf.mxu0 }
  0xf7   :  { %v267_v12 = vadd.f32 %v266_v58, %v186_v60 }
  0xf8   :  { %v268_v59 = vpop.f32.mrf.mxu0 }
  0xf9   :  { %v281_v17 = vmax.f32 %v267_v12, 0.0 }
  0xfa   :  { %v269_v61 = vpop.f32.mrf.mxu0 }
  0xfb   :  { %v270_v8 = vadd.f32 %v269_v61, %v191_v1 }
  0xfc   :  { %v271_v63 = vpop.f32.mrf.mxu0 }
  0xfd   :  { %v282_v15 = vmax.f32 %v270_v8, 0.0 }
  0xfe   :  { %v274_v0 = vpop.f32.mrf.mxu0 }
  0xff   :  { %v275_v3 = vadd.f32 %v274_v0, %v196_v62  ;;  %v287_v18 = vpack.c.bf16 %v282_v15, %v281_v17 }
 0x100   :  { %v276_v2 = vpop.f32.mrf.mxu0 }
 0x101   :  { %v283_v13 = vmax.f32 %v275_v3, 0.0 }
 0x102   :  { %v277_v6 = vpop.f32.mrf.mxu0 }
 0x103   :  { %v278_v9 = vadd.f32 %v277_v6, %v201_v4 }
 0x104   :  { %v279_v10 = vpop.f32.mrf.mxu0 }
 0x105   :  { %v284_v14 = vmax.f32 %v278_v9, 0.0 }
 0x107   :  { %v288_v16 = vpack.c.bf16 %v284_v14, %v283_v13 }
 0x109   :  { %505 = vmatpush3.bf16.msra.mxu1 %v288_v16 }
 0x10a   :  { %506 = vmatprep.subr.bf16.mxu1 %v559_v7 }
 0x10d   :  { %507 = vmatpush3.bf16.msra.mxu1 %v287_v18 }
 0x10e   :  { %512 = vmatprep.subr.bf16.mxu1 %v559_v7 }
 0x110   :  { %509 = vmatmul.mubr.msk.bf16.vlgmr.msra.gmra.mxu1 %vm306_vm0, %v531_v19 }
 0x111   :  { %514 = vmatprep.mubr.msk.bf16.mxu1 %vm561_vm8, %v559_v7 }
 0x1d0   :  { %v344_v20 = vpop.f32.mrf.mxu1 }
 0x1d1   :  { %v345_v23 = vadd.f32 %v344_v20, %v294_v21 }
 0x1d2   :  { %v510_v22 = vpop.f32.mrf.mxu1 }
 0x1d3   :  { %v351_v28 = vmax.f32 %v345_v23, 0.0 }
 0x1d4   :  { %v347_v25 = vpop.f32.mrf.mxu1 }
 0x1d5   :  { %v348_v26 = vadd.f32 %v347_v25, %v299_v24 }
 0x1d6   :  { %v511_v27 = vpop.f32.mrf.mxu1 }
 0x1d7   :  { %v352_v29 = vmax.f32 %v348_v26, 0.0 }
 0x1d9   :  { %v354_v30 = vpack.c.bf16 %v352_v29, %v351_v28 }
 0x1db   :  { %513 = vmatpush3.bf16.msra.mxu1 %v354_v30 }
 0x1de   :  { %515 = vmatmul.mubr.msk.bf16.vlgmr.msra.gmra.mxu1 %vm361_vm9, %v353_v31 }
 0x29e   :  { %v399_v7 = vpop.f32.mrf.mxu1 }
 0x29f   :  { %v400_v33 = vadd.f32 %v399_v7, %v359_v32 }
 0x2a0   :  { %v516_v34 = vpop.f32.mrf.mxu1 }
 0x2a1   :  { %v405_v35 = vmax.f32 %v400_v33, 0.0 }
 0x2a2   :  { %v402_v37 = vpop.f32.mrf.mxu1 }
 0x2a3   :  { %v412_v38 = vmul.f32 %v410_v36, %v405_v35 }
 0x2a4   :  { %v517_v39 = vpop.f32.mrf.mxu1 }
 0x2a5   :  { %v413_v40 = vrot.slane %v412_v38, 4 }
 0x2a7   :  { %v414_v41 = vadd.f32 %v413_v40, %v412_v38 }
 0x2a9   :  { %v415_v42 = vrot.slane %v414_v41, 2 }
 0x2ab   :  { %v416_v43 = vadd.f32 %v415_v42, %v414_v41 }
 0x2ad   :  { %v417_v45 = vrot.slane %v416_v43, 1 }
 0x2af   :  { %v418_v47 = vadd.f32 %v417_v45, %v416_v43 }
 0x2b1   :  { %v429_v48 = vadd.f32 %v428_v46, %v418_v47 }
 0x2b3   :  { %v498_v49 = vmul.f32 -1.442695, %v429_v48 }
 0x2b5   :  { %532 = vpow2.f32 %v498_v49 }
 0x2c2   :  { %v533_v50 = vpop.eup %532 }
 0x2c3   :  { %v433_v51 = vadd.f32 1.0, %v533_v50 }
 0x2c5   :  { %534 = vrcp.f32 %v433_v51 }
 0x2d2   :  { %v535_v52 = vpop.eup %534 }
 0x2d3   :  { %436 = vst [vmem:[#allocation3] sm:$0x1] %v535_v52 }
 0x2d4   :  { %547 = shalt.err (!%p544_p4)
}
 0x2d5   :  { %446 = dma.vmem_to_hbm [thread:$0]  %s444_s18, 16, %s862_s10, [#allocation4]  }
 0x2d6   :  { %556 = dma.done.wait [#allocation4], 16  }
 0x2d7   :  { %557 = vsyncadd [#allocation4], 4294967280 }
 0x2d8   :  { %450 = vsyncpa [#allocation4], 1 }

</bundles_post_ra>
